<compile_context>
chip_gen: v7x
topology: tpu7x:2x2x1
jax: 0.10.0
libtpu: 0.0.40
codegen_flags: <defaults>
</compile_context>

<pallas_src>
import jax
import jax.numpy as jnp
import numpy as np
from jax import lax
from jax.experimental import pallas as pl
from jax.experimental.pallas import tpu as pltpu

LANE = 128


def _round_up(x, m):
    return (x + m - 1) // m * m


# ----------------------------------------------------------------------------- #
# Fused per-instance kernel body (runs once per grid step b)
# ----------------------------------------------------------------------------- #
def make_gcnn_kernel(kernel_size: int, num_sel: int):
    K = kernel_size

    def gcnn_kernel(
        int_index_ref,            # SMEM (B, num_sel) int32 (scalar prefetch)
        prot_ref,                 # VMEM (n_prot, d_prot_p)   [batch squeezed]
        sub_ref,                  # VMEM (n_sub,  d_sub_p)
        w_prot_ref, b_prot_ref,   # VMEM (d_prot_p, d_proj_p), (1, d_proj_p)
        w_sub_ref, b_sub_ref,     # VMEM (d_sub_p,  d_proj_p), (1, d_proj_p) (bias * num_sel)
        wa_w_ref,                 # VMEM (1, d_proj_p)  window-half of attention weight
        w_out_ref,                # VMEM (d_proj_p, d_sub_p + d_prot_p)  fused out-proj
        prot_new_ref,             # out VMEM (n_prot, d_prot_p)
        sub_new_ref,              # out VMEM (n_sub,  d_sub_p)
    ):
        b = pl.program_id(0)
        prot = prot_ref[...]                       # (n_prot, d_prot_p)
        sub = sub_ref[...]                         # (n_sub,  d_sub_p)
        n_prot, d_prot_p = prot.shape
        n_sub, d_sub_p = sub.shape
        nw = n_prot - K + 1                        # num_windows (static)
        nw_pad = _round_up(nw, 8)                  # sublane-aligned window count

        # ---- 1) prot_proj = prot_node @ W_prot + b  (MXU, N=128 lanes) ----------
        prot_proj = (
            jnp.dot(prot, w_prot_ref[...], preferred_element_type=jnp.float32)
            + b_prot_ref[...]
        )                                          # (n_prot, d_proj_p)

        # ---- 2) reaction potion (in-kernel gather via count mask, sums on MXU) --
        lane_sub = lax.broadcasted_iota(jnp.int32, (1, n_sub), 1)
        sub_rows = lax.broadcasted_iota(jnp.int32, (n_sub, 1), 0)
        count_row = jnp.zeros((1, n_sub), jnp.float32)     # duplicate-counting (for sum)
        sel_bin = jnp.zeros((n_sub, 1), jnp.float32)       # binary (for the += update)
        for j in range(num_sel):                           # tiny static unroll, SMEM reads
            idx_j = int_index_ref[b, j]
            count_row = count_row + jnp.where(lane_sub == idx_j, 1.0, 0.0)
            sel_bin = jnp.maximum(sel_bin, jnp.where(sub_rows == idx_j, 1.0, 0.0))
        sel_sum = jnp.dot(count_row, sub, preferred_element_type=jnp.float32)  # (1, d_sub_p)
        rp = (
            jnp.dot(sel_sum, w_sub_ref[...], preferred_element_type=jnp.float32)
            + b_sub_ref[...]                                # bias already scaled by num_sel
        )                                                   # (1, d_proj_p)

        # ---- 3) windowed attention: banded softmax matrix + one MXU matmul ------
        # TODO(synk): original slices kernel-1 rows (prot_proj[i:i+kernel-1]) but then
        # reshapes attention to (1, kernel); we use `kernel` rows consistently.
        # TODO(synk): nn.Dropout on the concatenated score is identity in eval mode.
        # Per-row logit r = <prot_proj_row, wa_w> as a rhs-transposed matmul (MXU);
        # the rp/bias part of the logit is window-independent and cancels in softmax.
        r_row = lax.dot_general(
            wa_w_ref[...], prot_proj,
            dimension_numbers=(((1,), (1,)), ((), ())),
            preferred_element_type=jnp.float32)             # (1, n_prot)

        row_i = lax.broadcasted_iota(jnp.int32, (nw_pad, n_prot), 0)
        col_j = lax.broadcasted_iota(jnp.int32, (nw_pad, n_prot), 1)
        band = jnp.logical_and(col_j >= row_i, col_j < row_i + K)
        logits = jnp.where(band, r_row, jnp.float32(-1e30))
        m = jnp.max(logits, axis=1, keepdims=True)          # (nw_pad, 1)
        e = jnp.where(band, jnp.exp(logits - m), 0.0)
        denom = jnp.sum(e, axis=1, keepdims=True)
        denom = jnp.where(denom > 0.0, denom, 1.0)          # guard phantom padded rows
        att = e / denom                                     # exact reciprocal (argmax safety)
        local = jnp.dot(att, prot_proj, preferred_element_type=jnp.float32)
        scores = local + rp                                 # (nw_pad, d_proj_p)

        # ---- 4) rank / first-argmax / fused output projection --------------------
        rank = jnp.sum(scores, axis=1, keepdims=True)       # (nw_pad, 1)
        ridx = lax.broadcasted_iota(jnp.int32, (nw_pad, 1), 0)
        rank = jnp.where(ridx < nw, rank, jnp.float32(-3e38))   # mask padded windows
        top = jnp.min(jnp.where(rank == jnp.max(rank), ridx, nw_pad))   # first argmax
        onehot_row = jnp.where(
            lax.broadcasted_iota(jnp.int32, (1, nw_pad), 1) == top, 1.0, 0.0)
        top_row = jnp.dot(onehot_row, scores, preferred_element_type=jnp.float32)  # (1, d_proj_p)
        # TODO(synk): original uses `score[top_window]` (shape-inconsistent leftover
        # tensor); we use the top window's score row, matching the reference.
        delta = jnp.dot(top_row, w_out_ref[...], preferred_element_type=jnp.float32)
        dsub = delta[:, 0:d_sub_p]                          # (1, d_sub_p)
        dprot = delta[:, d_sub_p:d_sub_p + d_prot_p]        # (1, d_prot_p)

        # ---- 5) "in-place" updates as full lane-dense slab writes ----------------
        # sub_node[int_index] += dsub  (last-write-wins for duplicates -> binary mask)
        sub_new_ref[...] = sub + sel_bin * dsub
        # prot_node[top : top + kernel] += dprot
        # TODO(synk): original writes `prot_node[window:window+kernel-1]` (slicing with
        # a tensor); interpreted as the rows of the top-scoring window.
        prot_rows = lax.broadcasted_iota(jnp.int32, (n_prot, 1), 0)
        pmask = jnp.where(
            jnp.logical_and(prot_rows >= top, prot_rows < top + K), 1.0, 0.0)
        prot_new_ref[...] = prot + pmask * dprot

    return gcnn_kernel


# ----------------------------------------------------------------------------- #
# Wrapper: batched pallas_call, lane-padded operands, weights VMEM-resident
# ----------------------------------------------------------------------------- #
def gcnn_forward_batched(params, prot_node, sub_node, int_index, kernel_size):
    B, n_prot, d_prot_node = prot_node.shape
    _, n_sub, d_sub_node = sub_node.shape
    num_sel = int(int_index.shape[1])
    d_proj = int(params["w_prot"].shape[1])
    K = int(kernel_size)
    assert n_prot >= K, "need at least one attention window (n_prot >= kernel)"

    d_prot_p = _round_up(d_prot_node, LANE)
    d_sub_p = _round_up(d_sub_node, LANE)
    d_proj_p = _round_up(d_proj, LANE)
    f32 = jnp.float32

    def pad2(x, r, c):
        x = jnp.asarray(x, f32)
        return jnp.pad(x, ((0, r - x.shape[0]), (0, c - x.shape[1])))

    # --- lane-pad all weights in the wrapper (zero pad => exact same math) -------
    w_prot_p = pad2(params["w_prot"], d_prot_p, d_proj_p)
    b_prot_p = pad2(params["b_prot"], 1, d_proj_p)
    w_sub_p = pad2(params["w_sub"], d_sub_p, d_proj_p)
    b_sub_p = pad2(float(num_sel) * params["b_sub"], 1, d_proj_p)   # fold num_sel * bias
    wa_w_p = pad2(params["w_att"][:, :d_proj], 1, d_proj_p)
    # (rp-half of attention weight and the attention bias cancel in softmax -> dropped)
    w_out_p = jnp.concatenate(
        [pad2(params["sub_out"], d_proj_p, d_sub_p),
         pad2(params["prot_out"], d_proj_p, d_prot_p)], axis=1)      # (d_proj_p, d_sub_p+d_prot_p)

    prot_p = jnp.pad(jnp.asarray(prot_node, f32),
                     ((0, 0), (0, 0), (0, d_prot_p - d_prot_node)))
    sub_p = jnp.pad(jnp.asarray(sub_node, f32),
                    ((0, 0), (0, 0), (0, d_sub_p - d_sub_node)))

    grid_spec = pltpu.PrefetchScalarGridSpec(
        num_scalar_prefetch=1,               # int_index table lives in SMEM
        grid=(B,),
        in_specs=[
            # per-instance blocks (batch dim squeezed away in the kernel)
            pl.BlockSpec((None, n_prot, d_prot_p), lambda b, idx: (b, 0, 0)),
            pl.BlockSpec((None, n_sub, d_sub_p), lambda b, idx: (b, 0, 0)),
            # shared weights: constant index_map -> DMA'd once, VMEM-resident
            pl.BlockSpec((d_prot_p, d_proj_p), lambda b, idx: (0, 0)),
            pl.BlockSpec((1, d_proj_p), lambda b, idx: (0, 0)),
            pl.BlockSpec((d_sub_p, d_proj_p), lambda b, idx: (0, 0)),
            pl.BlockSpec((1, d_proj_p), lambda b, idx: (0, 0)),
            pl.BlockSpec((1, d_proj_p), lambda b, idx: (0, 0)),
            pl.BlockSpec((d_proj_p, d_sub_p + d_prot_p), lambda b, idx: (0, 0)),
        ],
        out_specs=(
            pl.BlockSpec((None, n_prot, d_prot_p), lambda b, idx: (b, 0, 0)),
            pl.BlockSpec((None, n_sub, d_sub_p), lambda b, idx: (b, 0, 0)),
        ),
    )

    prot_new_p, sub_new_p = pl.pallas_call(
        make_gcnn_kernel(K, num_sel),
        grid_spec=grid_spec,
        out_shape=(
            jax.ShapeDtypeStruct((B, n_prot, d_prot_p), f32),
            jax.ShapeDtypeStruct((B, n_sub, d_sub_p), f32),
        ),
        # operand 1 = prot_p -> output 0, operand 2 = sub_p -> output 1
        # (operand 0 is the scalar-prefetch int_index table)
        input_output_aliases={1: 0, 2: 1},
        compiler_params=pltpu.CompilerParams(
            dimension_semantics=("parallel",)),   # v7x: batch over both TensorCores
    )(int_index.astype(jnp.int32), prot_p, sub_p,
      w_prot_p, b_prot_p, w_sub_p, b_sub_p, wa_w_p, w_out_p)

    return (prot_new_p[:, :, :d_prot_node],
            sub_new_p[:, :, :d_sub_node],
            int_index)


# ----------------------------------------------------------------------------- #
# Pure-numpy (float64) reference of the same interpreted forward semantics
# ----------------------------------------------------------------------------- #
def _reference_forward(params, prot_node, sub_node, int_index, K):
    p = {k: np.asarray(v, np.float64) for k, v in params.items()}
    prot = np.asarray(prot_node, np.float64).copy()
    sub = np.asarray(sub_node, np.float64).copy()
    idx = np.asarray(int_index)
    d_proj = p["w_prot"].shape[1]

    prot_proj = prot @ p["w_prot"] + p["b_prot"]
    rp = (sub[idx] @ p["w_sub"] + p["b_sub"]).sum(axis=0, keepdims=True)
    nw = prot.shape[0] - K + 1
    wa_w, wa_r = p["w_att"][:, :d_proj], p["w_att"][:, d_proj:]
    scores = np.zeros((nw, d_proj))
    for i in range(nw):
        window = prot_proj[i:i + K]
        logits = ((window * wa_w).sum(1, keepdims=True)
                  + (rp * wa_r).sum() + p["b_att"][0, 0])
        e = np.exp(logits - logits.max())
        att = e / e.sum()
        scores[i] = (att * window).sum(0) + rp[0]
    top = int(np.argmax(scores.sum(1)))
    dsub = scores[top:top + 1] @ p["sub_out"]
    dprot = scores[top:top + 1] @ p["prot_out"]
    sub[np.unique(idx)] += dsub          # last-write-wins for duplicate indices
    prot[top:top + K] += dprot
    return prot, sub


# ----------------------------------------------------------------------------- #
if __name__ == "__main__":
    key = jax.random.PRNGKey(0)

    # module hyper-params (GCNN(d_sub_node, d_prot_node, d_proj, kernel, dropout))
    d_sub_node, d_prot_node, d_proj, kernel_size = 16, 32, 32, 4
    B, n_prot, n_sub, num_sel = 8, 16, 8, 3

    ks = jax.random.split(key, 11)
    params = {
        # nn.Linear weights stored pre-transposed: (in, out)
        "w_prot":  0.1 * jax.random.normal(ks[0], (d_prot_node, d_proj), jnp.float32),
        "b_prot":  0.1 * jax.random.normal(ks[1], (1, d_proj), jnp.float32),
        "w_sub":   0.1 * jax.random.normal(ks[2], (d_sub_node, d_proj), jnp.float32),
        "b_sub":   0.1 * jax.random.normal(ks[3], (1, d_proj), jnp.float32),
        # attention_proj: Linear(2*d_proj, 1) -> weight (1, 2*d_proj), bias (1, 1)
        "w_att":   0.1 * jax.random.normal(ks[4], (1, 2 * d_proj), jnp.float32),
        "b_att":   0.1 * jax.random.normal(ks[5], (1, 1), jnp.float32),
        # raw nn.Parameter tensors
        "sub_out": 0.1 * jax.random.normal(ks[6], (d_proj, d_sub_node), jnp.float32),
        "prot_out": 0.1 * jax.random.normal(ks[7], (d_proj, d_prot_node), jnp.float32),
    }

    prot_node = jax.random.normal(ks[8], (B, n_prot, d_prot_node), jnp.float32)
    sub_node = jax.random.normal(ks[9], (B, n_sub, d_sub_node), jnp.float32)
    int_index = jax.random.randint(ks[10], (B, num_sel), 0, n_sub, dtype=jnp.int32)

    prot_new, sub_new, idx_out = gcnn_forward_batched(
        params, prot_node, sub_node, int_index, kernel_size)
    jax.block_until_ready((prot_new, sub_new))

    for b in range(B):
        prot_ref, sub_ref = _reference_forward(
            params, np.asarray(prot_node[b]), np.asarray(sub_node[b]),
            np.asarray(int_index[b]), kernel_size)
        assert np.allclose(np.asarray(prot_new[b]), prot_ref, atol=1e-2, rtol=1e-2)
        assert np.allclose(np.asarray(sub_new[b]), sub_ref, atol=1e-2, rtol=1e-2)
    print("KERNEL_OK")
</pallas_src>

<mosaic_0001>
module attributes {stable_mosaic.version = 11 : i64} {
  func.func @gcnn_kernel(%arg0: i32, %arg1: memref<8x3xi32, #tpu.memory_space<smem>>, %arg2: memref<1x16x128xf32, #tpu.memory_space<vmem>>, %arg3: memref<1x8x128xf32, #tpu.memory_space<vmem>>, %arg4: memref<128x128xf32, #tpu.memory_space<vmem>>, %arg5: memref<1x128xf32, #tpu.memory_space<vmem>>, %arg6: memref<128x128xf32, #tpu.memory_space<vmem>>, %arg7: memref<1x128xf32, #tpu.memory_space<vmem>>, %arg8: memref<1x128xf32, #tpu.memory_space<vmem>>, %arg9: memref<128x256xf32, #tpu.memory_space<vmem>>, %arg10: memref<1x16x128xf32, #tpu.memory_space<vmem>>, %arg11: memref<1x8x128xf32, #tpu.memory_space<vmem>>) attributes {dimension_semantics = [#tpu.dimension_semantics<parallel>], iteration_bounds = array<i64: 8>, scalar_prefetch = 1 : i64, scratch_operands = 0 : i64, tpu.core_type = #tpu.core_type<tc>, window_params = [{transform_indices = @transform_0, window_bounds = array<i64: 1, 16, 128>}, {transform_indices = @transform_1, window_bounds = array<i64: 1, 8, 128>}, {pipeline_mode = #tpu.pipeline_mode<synchronous>, transform_indices = @transform_2, window_bounds = array<i64: 128, 128>}, {pipeline_mode = #tpu.pipeline_mode<synchronous>, transform_indices = @transform_3, window_bounds = array<i64: 1, 128>}, {pipeline_mode = #tpu.pipeline_mode<synchronous>, transform_indices = @transform_4, window_bounds = array<i64: 128, 128>}, {pipeline_mode = #tpu.pipeline_mode<synchronous>, transform_indices = @transform_5, window_bounds = array<i64: 1, 128>}, {pipeline_mode = #tpu.pipeline_mode<synchronous>, transform_indices = @transform_6, window_bounds = array<i64: 1, 128>}, {pipeline_mode = #tpu.pipeline_mode<synchronous>, transform_indices = @transform_7, window_bounds = array<i64: 128, 256>}, {transform_indices = @transform_8, window_bounds = array<i64: 1, 16, 128>}, {transform_indices = @transform_9, window_bounds = array<i64: 1, 8, 128>}]} {
    %c0 = arith.constant 0 : index
    %c0_0 = arith.constant 0 : index
    %c0_1 = arith.constant 0 : index
    %0 = vector.load %arg2[%c0, %c0_0, %c0_1] : memref<1x16x128xf32, #tpu.memory_space<vmem>>, vector<1x16x128xf32>
    %1 = vector.shape_cast %0 : vector<1x16x128xf32> to vector<16x128xf32>
    %c0_2 = arith.constant 0 : index
    %c0_3 = arith.constant 0 : index
    %c0_4 = arith.constant 0 : index
    %2 = vector.load %arg3[%c0_2, %c0_3, %c0_4] : memref<1x8x128xf32, #tpu.memory_space<vmem>>, vector<1x8x128xf32>
    %3 = vector.shape_cast %2 : vector<1x8x128xf32> to vector<8x128xf32>
    %c0_5 = arith.constant 0 : index
    %c0_6 = arith.constant 0 : index
    %4 = vector.load %arg4[%c0_5, %c0_6] : memref<128x128xf32, #tpu.memory_space<vmem>>, vector<128x128xf32>
    %cst = arith.constant dense<0.000000e+00> : vector<16x128xf32>
    %5 = tpu.matmul %1, %4, %cst {dimension_numbers = #tpu.dot_dimension_numbers<[1], [0], [0], [1], [0, 0, 1, 1], [], []>} : vector<16x128xf32>, vector<128x128xf32>, vector<16x128xf32> -> vector<16x128xf32>
    %c0_7 = arith.constant 0 : index
    %c0_8 = arith.constant 0 : index
    %6 = vector.load %arg5[%c0_7, %c0_8] : memref<1x128xf32, #tpu.memory_space<vmem>>, vector<1x128xf32>
    %7 = vector.broadcast %6 : vector<1x128xf32> to vector<16x128xf32>
    %8 = arith.addf %5, %7 : vector<16x128xf32>
    %9 = tpu.iota {dimensions = array<i32: 1>} : vector<1x8xi32>
    %10 = tpu.iota {dimensions = array<i32: 0>} : vector<8x1xi32>
    %cst_9 = arith.constant 0.000000e+00 : f32
    %11 = vector.broadcast %cst_9 : f32 to vector<1x8xf32>
    %cst_10 = arith.constant 0.000000e+00 : f32
    %12 = vector.broadcast %cst_10 : f32 to vector<8x1xf32>
    %13 = arith.index_cast %arg0 : i32 to index
    %c0_11 = arith.constant 0 : index
    %14 = memref.load %arg1[%13, %c0_11] : memref<8x3xi32, #tpu.memory_space<smem>>
    %15 = vector.broadcast %14 : i32 to vector<1x8xi32>
    %16 = arith.cmpi eq, %9, %15 : vector<1x8xi32>
    %cst_12 = arith.constant 1.000000e+00 : f32
    %cst_13 = arith.constant 0.000000e+00 : f32
    %17 = vector.broadcast %cst_12 : f32 to vector<1x8xf32>
    %18 = vector.broadcast %cst_13 : f32 to vector<1x8xf32>
    %19 = arith.select %16, %17, %18 : vector<1x8xi1>, vector<1x8xf32>
    %20 = arith.addf %11, %19 : vector<1x8xf32>
    %21 = vector.broadcast %14 : i32 to vector<8x1xi32>
    %22 = arith.cmpi eq, %10, %21 : vector<8x1xi32>
    %cst_14 = arith.constant 1.000000e+00 : f32
    %cst_15 = arith.constant 0.000000e+00 : f32
    %23 = vector.broadcast %cst_14 : f32 to vector<8x1xf32>
    %24 = vector.broadcast %cst_15 : f32 to vector<8x1xf32>
    %25 = arith.select %22, %23, %24 : vector<8x1xi1>, vector<8x1xf32>
    %26 = arith.maximumf %12, %25 : vector<8x1xf32>
    %27 = arith.index_cast %arg0 : i32 to index
    %c1 = arith.constant 1 : index
    %28 = memref.load %arg1[%27, %c1] : memref<8x3xi32, #tpu.memory_space<smem>>
    %29 = vector.broadcast %28 : i32 to vector<1x8xi32>
    %30 = arith.cmpi eq, %9, %29 : vector<1x8xi32>
    %cst_16 = arith.constant 1.000000e+00 : f32
    %cst_17 = arith.constant 0.000000e+00 : f32
    %31 = vector.broadcast %cst_16 : f32 to vector<1x8xf32>
    %32 = vector.broadcast %cst_17 : f32 to vector<1x8xf32>
    %33 = arith.select %30, %31, %32 : vector<1x8xi1>, vector<1x8xf32>
    %34 = arith.addf %20, %33 : vector<1x8xf32>
    %35 = vector.broadcast %28 : i32 to vector<8x1xi32>
    %36 = arith.cmpi eq, %10, %35 : vector<8x1xi32>
    %cst_18 = arith.constant 1.000000e+00 : f32
    %cst_19 = arith.constant 0.000000e+00 : f32
    %37 = vector.broadcast %cst_18 : f32 to vector<8x1xf32>
    %38 = vector.broadcast %cst_19 : f32 to vector<8x1xf32>
    %39 = arith.select %36, %37, %38 : vector<8x1xi1>, vector<8x1xf32>
    %40 = arith.maximumf %26, %39 : vector<8x1xf32>
    %41 = arith.index_cast %arg0 : i32 to index
    %c2 = arith.constant 2 : index
    %42 = memref.load %arg1[%41, %c2] : memref<8x3xi32, #tpu.memory_space<smem>>
    %43 = vector.broadcast %42 : i32 to vector<1x8xi32>
    %44 = arith.cmpi eq, %9, %43 : vector<1x8xi32>
    %cst_20 = arith.constant 1.000000e+00 : f32
    %cst_21 = arith.constant 0.000000e+00 : f32
    %45 = vector.broadcast %cst_20 : f32 to vector<1x8xf32>
    %46 = vector.broadcast %cst_21 : f32 to vector<1x8xf32>
    %47 = arith.select %44, %45, %46 : vector<1x8xi1>, vector<1x8xf32>
    %48 = arith.addf %34, %47 : vector<1x8xf32>
    %49 = vector.broadcast %42 : i32 to vector<8x1xi32>
    %50 = arith.cmpi eq, %10, %49 : vector<8x1xi32>
    %cst_22 = arith.constant 1.000000e+00 : f32
    %cst_23 = arith.constant 0.000000e+00 : f32
    %51 = vector.broadcast %cst_22 : f32 to vector<8x1xf32>
    %52 = vector.broadcast %cst_23 : f32 to vector<8x1xf32>
    %53 = arith.select %50, %51, %52 : vector<8x1xi1>, vector<8x1xf32>
    %54 = arith.maximumf %40, %53 : vector<8x1xf32>
    %cst_24 = arith.constant dense<0.000000e+00> : vector<1x128xf32>
    %55 = tpu.matmul %48, %3, %cst_24 {dimension_numbers = #tpu.dot_dimension_numbers<[1], [0], [0], [1], [0, 0, 1, 1], [], []>} : vector<1x8xf32>, vector<8x128xf32>, vector<1x128xf32> -> vector<1x128xf32>
    %c0_25 = arith.constant 0 : index
    %c0_26 = arith.constant 0 : index
    %56 = vector.load %arg6[%c0_25, %c0_26] : memref<128x128xf32, #tpu.memory_space<vmem>>, vector<128x128xf32>
    %cst_27 = arith.constant dense<0.000000e+00> : vector<1x128xf32>
    %57 = tpu.matmul %55, %56, %cst_27 {dimension_numbers = #tpu.dot_dimension_numbers<[1], [0], [0], [1], [0, 0, 1, 1], [], []>} : vector<1x128xf32>, vector<128x128xf32>, vector<1x128xf32> -> vector<1x128xf32>
    %c0_28 = arith.constant 0 : index
    %c0_29 = arith.constant 0 : index
    %58 = vector.load %arg7[%c0_28, %c0_29] : memref<1x128xf32, #tpu.memory_space<vmem>>, vector<1x128xf32>
    %59 = arith.addf %57, %58 : vector<1x128xf32>
    %c0_30 = arith.constant 0 : index
    %c0_31 = arith.constant 0 : index
    %60 = vector.load %arg8[%c0_30, %c0_31] : memref<1x128xf32, #tpu.memory_space<vmem>>, vector<1x128xf32>
    %cst_32 = arith.constant dense<0.000000e+00> : vector<1x16xf32>
    %61 = tpu.matmul %60, %8, %cst_32 {dimension_numbers = #tpu.dot_dimension_numbers<[1], [1], [0], [0], [0, 0, 1, 0], [], []>} : vector<1x128xf32>, vector<16x128xf32>, vector<1x16xf32> -> vector<1x16xf32>
    %62 = tpu.iota {dimensions = array<i32: 0>} : vector<16x16xi32>
    %63 = tpu.iota {dimensions = array<i32: 1>} : vector<16x16xi32>
    %64 = arith.cmpi sge, %63, %62 : vector<16x16xi32>
    %c4_i32 = arith.constant 4 : i32
    %65 = vector.broadcast %c4_i32 : i32 to vector<16x16xi32>
    %66 = arith.addi %62, %65 : vector<16x16xi32>
    %67 = arith.cmpi slt, %63, %66 : vector<16x16xi32>
    %68 = arith.andi %64, %67 : vector<16x16xi1>
    %cst_33 = arith.constant -1.000000e+30 : f32
    %69 = vector.shape_cast %61 : vector<1x16xf32> to vector<1x16xf32>
    %70 = vector.broadcast %69 : vector<1x16xf32> to vector<16x16xf32>
    %71 = vector.broadcast %cst_33 : f32 to vector<16x16xf32>
    %72 = arith.select %68, %70, %71 : vector<16x16xi1>, vector<16x16xf32>
    %cst_34 = arith.constant dense<0xFF800000> : vector<16xf32>
    %73 = vector.multi_reduction <maximumf>, %72, %cst_34 [1] : vector<16x16xf32> to vector<16xf32>
    %74 = vector.shape_cast %73 : vector<16xf32> to vector<16x1xf32>
    %75 = vector.broadcast %74 : vector<16x1xf32> to vector<16x16xf32>
    %76 = arith.subf %72, %75 : vector<16x16xf32>
    %77 = math.exp %76 : vector<16x16xf32>
    %cst_35 = arith.constant 0.000000e+00 : f32
    %78 = vector.broadcast %cst_35 : f32 to vector<16x16xf32>
    %79 = arith.select %68, %77, %78 : vector<16x16xi1>, vector<16x16xf32>
    %cst_36 = arith.constant dense<0.000000e+00> : vector<16xf32>
    %80 = vector.multi_reduction <add>, %79, %cst_36 [1] : vector<16x16xf32> to vector<16xf32>
    %81 = vector.shape_cast %80 : vector<16xf32> to vector<16x1xf32>
    %cst_37 = arith.constant 0.000000e+00 : f32
    %82 = vector.broadcast %cst_37 : f32 to vector<16x1xf32>
    %83 = arith.cmpf ogt, %81, %82 : vector<16x1xf32>
    %cst_38 = arith.constant 1.000000e+00 : f32
    %84 = vector.broadcast %cst_38 : f32 to vector<16x1xf32>
    %85 = arith.select %83, %81, %84 : vector<16x1xi1>, vector<16x1xf32>
    %86 = vector.broadcast %85 : vector<16x1xf32> to vector<16x16xf32>
    %87 = arith.divf %79, %86 : vector<16x16xf32>
    %cst_39 = arith.constant dense<0.000000e+00> : vector<16x128xf32>
    %88 = tpu.matmul %87, %8, %cst_39 {dimension_numbers = #tpu.dot_dimension_numbers<[1], [0], [0], [1], [0, 0, 1, 1], [], []>} : vector<16x16xf32>, vector<16x128xf32>, vector<16x128xf32> -> vector<16x128xf32>
    %89 = vector.broadcast %59 : vector<1x128xf32> to vector<16x128xf32>
    %90 = arith.addf %88, %89 : vector<16x128xf32>
    %cst_40 = arith.constant dense<0.000000e+00> : vector<16xf32>
    %91 = vector.multi_reduction <add>, %90, %cst_40 [1] : vector<16x128xf32> to vector<16xf32>
    %92 = vector.shape_cast %91 : vector<16xf32> to vector<16x1xf32>
    %93 = tpu.iota {dimensions = array<i32: 0>} : vector<16x1xi32>
    %c13_i32 = arith.constant 13 : i32
    %94 = vector.broadcast %c13_i32 : i32 to vector<16x1xi32>
    %95 = arith.cmpi slt, %93, %94 : vector<16x1xi32>
    %cst_41 = arith.constant -3.000000e+38 : f32
    %96 = vector.broadcast %cst_41 : f32 to vector<16x1xf32>
    %97 = arith.select %95, %92, %96 : vector<16x1xi1>, vector<16x1xf32>
    %98 = vector.shape_cast %97 : vector<16x1xf32> to vector<1x16x1xf32>
    %cst_42 = arith.constant dense<0xFF800000> : vector<1xf32>
    %99 = vector.multi_reduction <maximumf>, %98, %cst_42 [1, 2] : vector<1x16x1xf32> to vector<1xf32>
    %100 = vector.shape_cast %99 : vector<1xf32> to vector<1x1x1xf32>
    %101 = vector.extract %100[0, 0, 0] : f32 from vector<1x1x1xf32>
    %102 = vector.broadcast %101 : f32 to vector<16x1xf32>
    %103 = arith.cmpf oeq, %97, %102 : vector<16x1xf32>
    %c16_i32 = arith.constant 16 : i32
    %104 = vector.broadcast %c16_i32 : i32 to vector<16x1xi32>
    %105 = arith.select %103, %93, %104 : vector<16x1xi1>, vector<16x1xi32>
    %106 = vector.shape_cast %105 : vector<16x1xi32> to vector<1x16x1xi32>
    %cst_43 = arith.constant dense<2147483647> : vector<1xi32>
    %107 = vector.multi_reduction <minsi>, %106, %cst_43 [1, 2] : vector<1x16x1xi32> to vector<1xi32>
    %108 = vector.shape_cast %107 : vector<1xi32> to vector<1x1x1xi32>
    %109 = vector.extract %108[0, 0, 0] : i32 from vector<1x1x1xi32>
    %110 = tpu.iota {dimensions = array<i32: 1>} : vector<1x16xi32>
    %111 = vector.broadcast %109 : i32 to vector<1x16xi32>
    %112 = arith.cmpi eq, %110, %111 : vector<1x16xi32>
    %cst_44 = arith.constant 1.000000e+00 : f32
    %cst_45 = arith.constant 0.000000e+00 : f32
    %113 = vector.broadcast %cst_44 : f32 to vector<1x16xf32>
    %114 = vector.broadcast %cst_45 : f32 to vector<1x16xf32>
    %115 = arith.select %112, %113, %114 : vector<1x16xi1>, vector<1x16xf32>
    %cst_46 = arith.constant dense<0.000000e+00> : vector<1x128xf32>
    %116 = tpu.matmul %115, %90, %cst_46 {dimension_numbers = #tpu.dot_dimension_numbers<[1], [0], [0], [1], [0, 0, 1, 1], [], []>} : vector<1x16xf32>, vector<16x128xf32>, vector<1x128xf32> -> vector<1x128xf32>
    %c0_47 = arith.constant 0 : index
    %c0_48 = arith.constant 0 : index
    %117 = vector.load %arg9[%c0_47, %c0_48] : memref<128x256xf32, #tpu.memory_space<vmem>>, vector<128x256xf32>
    %cst_49 = arith.constant dense<0.000000e+00> : vector<1x256xf32>
    %118 = tpu.matmul %116, %117, %cst_49 {dimension_numbers = #tpu.dot_dimension_numbers<[1], [0], [0], [1], [0, 0, 1, 1], [], []>} : vector<1x128xf32>, vector<128x256xf32>, vector<1x256xf32> -> vector<1x256xf32>
    %119 = vector.extract_strided_slice %118 {offsets = [0, 0], sizes = [1, 128], strides = [1, 1]} : vector<1x256xf32> to vector<1x128xf32>
    %120 = vector.extract_strided_slice %118 {offsets = [0, 128], sizes = [1, 128], strides = [1, 1]} : vector<1x256xf32> to vector<1x128xf32>
    %121 = vector.broadcast %54 : vector<8x1xf32> to vector<8x128xf32>
    %122 = vector.broadcast %119 : vector<1x128xf32> to vector<8x128xf32>
    %123 = arith.mulf %121, %122 : vector<8x128xf32>
    %124 = arith.addf %3, %123 : vector<8x128xf32>
    %c0_50 = arith.constant 0 : index
    %c0_51 = arith.constant 0 : index
    %c0_52 = arith.constant 0 : index
    %125 = vector.load %arg11[%c0_50, %c0_51, %c0_52] : memref<1x8x128xf32, #tpu.memory_space<vmem>>, vector<1x8x128xf32>
    %126 = vector.shape_cast %125 : vector<1x8x128xf32> to vector<8x128xf32>
    %127 = vector.shape_cast %124 : vector<8x128xf32> to vector<1x8x128xf32>
    tpu.vector_store %arg11[%c0_50, %c0_51, %c0_52], %127 {strides = array<i32>} : memref<1x8x128xf32, #tpu.memory_space<vmem>>, vector<1x8x128xf32>,
    %128 = tpu.iota {dimensions = array<i32: 0>} : vector<16x1xi32>
    %129 = vector.broadcast %109 : i32 to vector<16x1xi32>
    %130 = arith.cmpi sge, %128, %129 : vector<16x1xi32>
    %c4_i32_53 = arith.constant 4 : i32
    %131 = arith.addi %109, %c4_i32_53 : i32
    %132 = vector.broadcast %131 : i32 to vector<16x1xi32>
    %133 = arith.cmpi slt, %128, %132 : vector<16x1xi32>
    %134 = arith.andi %130, %133 : vector<16x1xi1>
    %cst_54 = arith.constant 1.000000e+00 : f32
    %cst_55 = arith.constant 0.000000e+00 : f32
    %135 = vector.broadcast %cst_54 : f32 to vector<16x1xf32>
    %136 = vector.broadcast %cst_55 : f32 to vector<16x1xf32>
    %137 = arith.select %134, %135, %136 : vector<16x1xi1>, vector<16x1xf32>
    %138 = vector.broadcast %137 : vector<16x1xf32> to vector<16x128xf32>
    %139 = vector.broadcast %120 : vector<1x128xf32> to vector<16x128xf32>
    %140 = arith.mulf %138, %139 : vector<16x128xf32>
    %141 = arith.addf %1, %140 : vector<16x128xf32>
    %c0_56 = arith.constant 0 : index
    %c0_57 = arith.constant 0 : index
    %c0_58 = arith.constant 0 : index
    %142 = vector.load %arg10[%c0_56, %c0_57, %c0_58] : memref<1x16x128xf32, #tpu.memory_space<vmem>>, vector<1x16x128xf32>
    %143 = vector.shape_cast %142 : vector<1x16x128xf32> to vector<16x128xf32>
    %144 = vector.shape_cast %141 : vector<16x128xf32> to vector<1x16x128xf32>
    tpu.vector_store %arg10[%c0_56, %c0_57, %c0_58], %144 {strides = array<i32>} : memref<1x16x128xf32, #tpu.memory_space<vmem>>, vector<1x16x128xf32>,
    return
  }
  func.func @transform_0(%arg0: i32, %arg1: memref<8x3xi32, #tpu.memory_space<smem>>) -> (i32, i32, i32) {
    %c0_i32 = arith.constant 0 : i32
    %c0_i32_0 = arith.constant 0 : i32
    %c0_i32_1 = arith.constant 0 : i32
    return %arg0, %c0_i32, %c0_i32_0 : i32, i32, i32
  }
  func.func @transform_1(%arg0: i32, %arg1: memref<8x3xi32, #tpu.memory_space<smem>>) -> (i32, i32, i32) {
    %c0_i32 = arith.constant 0 : i32
    %c0_i32_0 = arith.constant 0 : i32
    %c0_i32_1 = arith.constant 0 : i32
    return %arg0, %c0_i32, %c0_i32_0 : i32, i32, i32
  }
  func.func @transform_2(%arg0: i32, %arg1: memref<8x3xi32, #tpu.memory_space<smem>>) -> (i32, i32) {
    %c0_i32 = arith.constant 0 : i32
    %c0_i32_0 = arith.constant 0 : i32
    %c0_i32_1 = arith.constant 0 : i32
    return %c0_i32, %c0_i32_0 : i32, i32
  }
  func.func @transform_3(%arg0: i32, %arg1: memref<8x3xi32, #tpu.memory_space<smem>>) -> (i32, i32) {
    %c0_i32 = arith.constant 0 : i32
    %c0_i32_0 = arith.constant 0 : i32
    %c0_i32_1 = arith.constant 0 : i32
    return %c0_i32, %c0_i32_0 : i32, i32
  }
  func.func @transform_4(%arg0: i32, %arg1: memref<8x3xi32, #tpu.memory_space<smem>>) -> (i32, i32) {
    %c0_i32 = arith.constant 0 : i32
    %c0_i32_0 = arith.constant 0 : i32
    %c0_i32_1 = arith.constant 0 : i32
    return %c0_i32, %c0_i32_0 : i32, i32
  }
  func.func @transform_5(%arg0: i32, %arg1: memref<8x3xi32, #tpu.memory_space<smem>>) -> (i32, i32) {
    %c0_i32 = arith.constant 0 : i32
    %c0_i32_0 = arith.constant 0 : i32
    %c0_i32_1 = arith.constant 0 : i32
    return %c0_i32, %c0_i32_0 : i32, i32
  }
  func.func @transform_6(%arg0: i32, %arg1: memref<8x3xi32, #tpu.memory_space<smem>>) -> (i32, i32) {
    %c0_i32 = arith.constant 0 : i32
    %c0_i32_0 = arith.constant 0 : i32
    %c0_i32_1 = arith.constant 0 : i32
    return %c0_i32, %c0_i32_0 : i32, i32
  }
  func.func @transform_7(%arg0: i32, %arg1: memref<8x3xi32, #tpu.memory_space<smem>>) -> (i32, i32) {
    %c0_i32 = arith.constant 0 : i32
    %c0_i32_0 = arith.constant 0 : i32
    %c0_i32_1 = arith.constant 0 : i32
    return %c0_i32, %c0_i32_0 : i32, i32
  }
  func.func @transform_8(%arg0: i32, %arg1: memref<8x3xi32, #tpu.memory_space<smem>>) -> (i32, i32, i32) {
    %c0_i32 = arith.constant 0 : i32
    %c0_i32_0 = arith.constant 0 : i32
    %c0_i32_1 = arith.constant 0 : i32
    return %arg0, %c0_i32, %c0_i32_0 : i32, i32, i32
  }
  func.func @transform_9(%arg0: i32, %arg1: memref<8x3xi32, #tpu.memory_space<smem>>) -> (i32, i32, i32) {
    %c0_i32 = arith.constant 0 : i32
    %c0_i32_0 = arith.constant 0 : i32
    %c0_i32_1 = arith.constant 0 : i32
    return %arg0, %c0_i32, %c0_i32_0 : i32, i32, i32
  }
}

</mosaic_0001>

<bundles_post_ra>
// kernel: tpu_custom_call.1
= control target key start
LH: loop header
LB: loop body
LE: loop exit
PB: predicated region body
PF: predicated region fallthrough
CT: control target
= control target key end

     0   :  { %s2607_s0 = inlined_call_operand.vmem [shape: s32[8,3], index: 0, kind: input, shape index: {}]   ;;  %s2608_s1 = inlined_call_operand.hbm [shape: f32[8,16,128], index: 1, kind: input, shape index: {}, may-alias: {1,9}]   ;;  %s2609_s2 = inlined_call_operand.hbm [shape: f32[8,8,128], index: 2, kind: input, shape index: {}, may-alias: {2,10}]   ;;  %s2610_s3 = inlined_call_operand.hbm [shape: f32[128,128], index: 3, kind: input, shape index: {}]   ;;  %s2611_s4 = inlined_call_operand.vmem [shape: f32[1,128], index: 4, kind: input, shape index: {}]   ;;  %s2612_s5 = inlined_call_operand.hbm [shape: f32[128,128], index: 5, kind: input, shape index: {}]   ;;  %s2613_s6 = inlined_call_operand.vmem [shape: f32[1,128], index: 6, kind: input, shape index: {}]   ;;  %s2614_s7 = inlined_call_operand.vmem [shape: f32[1,128], index: 7, kind: input, shape index: {}]   ;;  %s2615_s8 = inlined_call_operand.vmem [shape: f32[128,256], index: 8, kind: input, shape index: {}]   ;;  %s2616_s9 = inlined_call_operand.hbm [shape: f32[8,16,128], index: 9, kind: output, shape index: {0}, may-alias: {1,9}]   ;;  %s2617_s10 = inlined_call_operand.hbm [shape: f32[8,8,128], index: 10, kind: output, shape index: {1}, may-alias: {2,10}]  }
   0x1   :  { %2628 = sst [smem:[#allocation26_spill]] %s2608_s1  ;;  %s16_s15 = sshll.u32 %s2607_s0, 4  ;;  %s17_s15 = int_to_ptr.vmem [resolvable:$true] %s16_s15 }
   0x2   :  { %2629 = sst [smem:[#allocation27_spill]] %s2610_s3  ;;  %s1716_s16 = scalar_lea.vmem %s17_s15, 128 }
   0x3   :  { %2630 = sst [smem:[#allocation28_spill]] %s2612_s5  ;;  %p1717_p0 = scmp.ne.s32.totalorder %s17_s15, %s1716_s16 }
   0x4   :  { %p1721_p1 = scmp.lt.s32.totalorder %s17_s15, %s17_s15  ;;  %p1722_p2 = scmp.lt.s32.totalorder %s1716_s16, %s1716_s16 }
   0x6   :  { %p1723_p3 = por %p1722_p2, %p1721_p1 }
   0x8   :  { %p1724_p4 = pnand %p1723_p3, %p1717_p0 }
   0xa   :  { %1727 = shalt.err (!%p1724_p4)  }
   0xb   :  { %s1958_s17 = smov [#allocation3]  }
   0xc   :  { %19 = dma.vmem_to_smem %s17_s15, 128, %s1958_s17, [#allocation2] }
   0xd   :  { %1916 = dma.done.wait [#allocation2], 128 }
   0xe   :  { %1917 = vsyncadd [#allocation2], 4294967168 }
   0xf   :  { %21 = sfence }
  0x10   :  { %22 = vsyncpa [#allocation5], 0 }
  0x11   :  { %24 = vsyncpa [#allocation5 + $0x1], 0 }
  0x12   :  { %25 = vsyncpa [#allocation8], 0 }
  0x13   :  { %27 = vsyncpa [#allocation8 + $0x1], 0 }
  0x14   :  { %28 = vsyncpa [#allocation11], 0 }
  0x15   :  { %29 = vsyncpa [#allocation6], 0 }
  0x16   :  { %31 = vsyncpa [#allocation6 + $0x1], 0 }
  0x17   :  { %32 = vsyncpa [#allocation14], 0 }
  0x18   :  { %34 = vsyncpa [#allocation14 + $0x1], 0  ;;  %s2030_s0 = smov 0   ;;  %s2032_s18 = smov 0  }
  0x19   :  { %s2034_s19 = smov 0   ;;  %s2036_s20 = smov 0  }
  0x1a LB: > { %2631 = sst [smem:[#allocation22_spill]] %s1952_s19  ;;  %s2051_s21 = sadd.s32 4294967295, %s1956_s20   ;;  %s1956_s20 = sphi %s2036_s20, %s2665_s20   ;;  %s1952_s19 = sphi %s2034_s19, %s2667_s19   ;;  %s1948_s18 = sphi %s2032_s18, %s2669_s18   ;;  %s1944_s0 = sphi %s2030_s0, %s2668_s0  }
  0x1b   : > { %s1346_s22 = sadd.s32 4294967294, %s1956_s20   ;;  %p60_p5 = scmp.ne.s32.totalorder %s1948_s18, %s1944_s0 }
  0x1c   : > { %p2618_p6 = scmp.eq.s32.totalorder %s2051_s21, 0  ;;  %p242_p8 = scmp.eq.s32.totalorder %s1346_s22, 7 }
  0x1d   : > { %p1347_p10 = scmp.ge.s32.totalorder %s1956_s20, 1  ;;  %p275_p12 = scmp.lt.s32.totalorder %s1956_s20, 9 }
  0x1e   : > { %p2060_p9 = por %p2618_p6, %p60_p5  ;;  %p2065_p11 = por %p242_p8, %p60_p5 }
  0x1f   : > { %p2070_p13 = pnand %p1347_p10, %p275_p12  ;;  %s1959_s26 = smov [#allocation9]  }
  0x20   : > { %s2632_s23 = scalar_select %p2060_p9, 1, 0 }
  0x21   : > { %s2633_s24 = scalar_select %p2065_p11, 1, 0 }
  0x22   : > { %s2635_s25 = scalar_select %p2070_p13, 1, 0 }
  0x23   : > { %2634 = sst [smem:[#allocation23_spill]] %s2633_s24  ;;  %s287_s27 = sshll.u32 %s1959_s26, 4  ;;  %s288_s27 = int_to_ptr.vmem [resolvable:$true] %s287_s27 }
  0x24   : > { %p1639_p0 = pneg %p2070_p13  ;;  %s1960_s29 = smov [#allocation10]  }
  0x25   : > { %s303_s30 = sshll.u32 %s1960_s29, 4  ;;  %s2637_s3 = sld [smem:[#allocation27_spill]]  ;;  %s2082_s30 = int_to_ptr.vmem [resolvable:$true] %s303_s30 }
  0x26   : > { %p2078_p1 = pnand %p1639_p0, %p2618_p6 }
  0x28   : > { %p1730_p3 = pneg %p2078_p1 }
  0x2b   : > { %s1728_s13 = scalar_lea.hbm %s2637_s3, 2048 }
  0x2c   : > { %p1729_p2 = scmp.ne.s32.totalorder %s2637_s3, %s1728_s13  ;;  %p1735_p8 = scmp.lt.u32.totalorder %s1728_s13, %s2637_s3 }
  0x2e   : > { %p1731_p4 = pnand %p1730_p3, %p1729_p2 }
  0x30   : > { %p1732_p5 = pneg %p1731_p4 }
  0x32   : > { %p1737_p10 = pnand %p1735_p8, %p1732_p5 }
  0x34   : > { %1740 = shalt.err (!%p1737_p10)
}
  0x35   : > { %s1741_s22 = scalar_lea.vmem %s288_s27, 2048  ;;  %p1749_p7 = scmp.lt.s32.totalorder %s288_s27, %s288_s27 }
  0x36   : > { %p1742_p12 = scmp.ne.s32.totalorder %s288_s27, %s1741_s22  ;;  %p1750_p11 = scmp.lt.s32.totalorder %s1741_s22, %s1741_s22 }
  0x38   : > { %p1744_p0 = pnand %p1742_p12, %p1730_p3  ;;  %p1751_p9 = por %p1750_p11, %p1749_p7 }
  0x3a   : > { %p1745_p6 = pneg %p1744_p0 }
  0x3c   : > { %p1752_p13 = pnand %p1751_p9, %p1745_p6 }
  0x3e   : > { %1755 = shalt.err (!%p1752_p13)
}
  0x3f   : > { %s2622_s26 = smov 128   ;;  %s2623_s29 = smov 8  }
  0x40   : > { %1642 = dma.hbm_to_vmem [thread:$0]  (!%p2078_p1), %s2637_s3, 2048, %s288_s27, [#allocation8], %s2622_s26, %s2622_s26, %s2623_s29  }
  0x41   : > { %s2638_s5 = sld [smem:[#allocation28_spill]] }
  0x47   : > { %s1756_s15 = scalar_lea.hbm %s2638_s5, 2048 }
  0x48   : > { %p1757_p6 = scmp.ne.s32.totalorder %s2638_s5, %s1756_s15  ;;  %p1763_p11 = scmp.lt.u32.totalorder %s1756_s15, %s2638_s5 }
  0x4a   : > { %p1759_p7 = pnand %p1757_p6, %p1730_p3 }
  0x4c   : > { %p1760_p9 = pneg %p1759_p7 }
  0x4e   : > { %p1765_p13 = pnand %p1763_p11, %p1760_p9 }
  0x50   : > { %1768 = shalt.err (!%p1765_p13)
}
  0x51   : > { %s1769_s27 = scalar_lea.vmem %s2082_s30, 2048  ;;  %p1777_p8 = scmp.lt.s32.totalorder %s2082_s30, %s2082_s30 }
  0x52   : > { %p1770_p2 = scmp.ne.s32.totalorder %s2082_s30, %s1769_s27  ;;  %p1778_p10 = scmp.lt.s32.totalorder %s1769_s27, %s1769_s27 }
  0x54   : > { %p1772_p4 = pnand %p1770_p2, %p1730_p3  ;;  %p1779_p12 = por %p1778_p10, %p1777_p8 }
  0x56   : > { %p1773_p5 = pneg %p1772_p4 }
  0x58   : > { %p1780_p0 = pnand %p1779_p12, %p1773_p5 }
  0x5a   : > { %1783 = shalt.err (!%p1780_p0)
}
  0x5b   : > { %1645 = dma.hbm_to_vmem [thread:$0]  (!%p2078_p1), %s2638_s5, 2048, %s2082_s30, [#allocation11], %s2622_s26, %s2622_s26, %s2623_s29  }
  0x5c   : > { %s2138_s28 = sadd.s32 1, %s1956_s20   ;;  %s47_s12 = sadd.s32 1, %s1952_s19 }
  0x5d   : > { %2639 = sst [smem:[#allocation24_spill]] %s2138_s28  ;;  %s44_s13 = ssub.s32 %s1956_s20, %s2138_s28 }
  0x5e   : > { %p54_p3 = scmp.ne.s32.totalorder %s1952_s19, %s1948_s18  ;;  %p45_p6 = scmp.eq.s32.totalorder %s44_s13, 0 }
  0x5f   : > { %p55_p7 = scmp.eq.s32.totalorder %s1956_s20, 0  ;;  %p2640_p9 = scmp.eq.s32.totalorder %s2051_s21, 7 }
  0x60   : > { %p1662_p13 = scmp.lt.s32.totalorder %s1956_s20, 8  ;;  %s2157_s16 = sand.u32 1, %s1952_s19  }
  0x61   : > { %p2148_p11 = por %p2640_p9, %p54_p3  ;;  %p56_p2 = por %p55_p7, %p54_p3 }
  0x62   : > { %s2154_s15 = scalar_select %p45_p6, %s1952_s19, %s47_s12  }
  0x63   : > { %s2641_s14 = scalar_select %p2148_p11, 1, 0 }
  0x64   : > { %2642 = sst [smem:[#allocation25_spill]] %s2154_s15  ;;  %s1351_s30 = sshll.u32 %s2157_s16, 4 }
  0x65   : > { %s1376_s17 = sshll.u32 %s1956_s20, 8  ;;  %s2643_s1 = sld [smem:[#allocation26_spill]] }
  0x66   : > { %s330_s11 = scalar_lea.vmem [#allocation4], %s1351_s30  ;;  %p2168_p1 = pnand %p1662_p13, %p56_p2 }
  0x67   : > { %s337_s12 = sshll.u32 %s330_s11, 4  ;;  %s1354_s29 = sshll.u32 %s2157_s16, 3  ;;  %s2166_s12 = int_to_ptr.vmem [resolvable:$true] %s337_s12 }
  0x68   : > { %s327_s3 = scalar_lea.sflag [#allocation5], %s2157_s16  ;;  %p1786_p5 = pneg %p2168_p1 }
  0x6b   : > { %s2164_s24 = scalar_lea.hbm %s2643_s1, %s1376_s17  ;;  %s1789_s27 = scalar_lea.hbm %s2643_s1, 2048 }
  0x6c   : > { %s1784_s22 = scalar_lea.hbm %s2164_s24, 256  ;;  %p1790_p12 = scmp.lt.u32.totalorder %s2164_s24, %s2643_s1 }
  0x6d   : > { %p1785_p4 = scmp.ne.s32.totalorder %s2164_s24, %s1784_s22  ;;  %p1791_p0 = scmp.lt.u32.totalorder %s1789_s27, %s1784_s22 }
  0x6e   : > { %p1793_p6 = scmp.lt.u32.totalorder %s1784_s22, %s2164_s24 }
  0x6f   : > { %p1787_p8 = pnand %p1786_p5, %p1785_p4  ;;  %p1792_p3 = por %p1791_p0, %p1790_p12 }
  0x71   : > { %p1788_p10 = pneg %p1787_p8  ;;  %p1794_p7 = por %p1793_p6, %p1792_p3 }
  0x73   : > { %p1795_p9 = pnand %p1794_p7, %p1788_p10 }
  0x75   : > { %1798 = shalt.err (!%p1795_p9)
}
  0x76   : > { %s1799_s26 = scalar_lea.vmem %s2166_s12, 256  ;;  %s1963_s30 = smov [#allocation4]  }
  0x77   : > { %p1800_p13 = scmp.ne.s32.totalorder %s2166_s12, %s1799_s26  ;;  %s1804_s17 = sshll.u32 %s1963_s30, 4  ;;  %s1805_s17 = int_to_ptr.vmem [resolvable:$false] %s1804_s17 }
  0x78   : > { %s1806_s5 = scalar_lea.vmem %s1805_s17, 512  ;;  %p1807_p8 = scmp.lt.s32.totalorder %s2166_s12, %s1805_s17 }
  0x79   : > { %p1802_p2 = pnand %p1800_p13, %p1786_p5  ;;  %p1808_p12 = scmp.lt.s32.totalorder %s1806_s5, %s1799_s26 }
  0x7b   : > { %p1803_p4 = pneg %p1802_p2  ;;  %p1809_p0 = por %p1808_p12, %p1807_p8 }
  0x7d   : > { %p1810_p3 = pnand %p1809_p0, %p1803_p4 }
  0x7f   : > { %1813 = shalt.err (!%p1810_p3)
}
  0x80   : > { %s2645_s22 = smov 8   ;;  %s2646_s27 = smov 128  }
  0x81   : > { %1649 = dma.hbm_to_vmem [thread:$0]  (!%p2168_p1), %s2164_s24, 256, %s2166_s12, %s327_s3, %s2646_s27, %s2646_s27, %s2645_s22  }
  0x82   : > { %s1355_s11 = sshll.u32 %s1956_s20, 7  ;;  %s351_s5 = scalar_lea.vmem [#allocation7], %s1354_s29 }
  0x83   : > { %s2209_s17 = scalar_lea.hbm %s2609_s2, %s1355_s11  ;;  %s358_s1 = sshll.u32 %s351_s5, 4  ;;  %s359_s1 = int_to_ptr.vmem [resolvable:$true] %s358_s1 }
  0x84   : > { %s2647_s15 = sand.u32 1, %s1956_s20   ;;  %s1814_s28 = scalar_lea.hbm %s2209_s17, 128 }
  0x85   : > { %s348_s19 = scalar_lea.sflag [#allocation8], %s2647_s15  ;;  %p1815_p10 = scmp.ne.s32.totalorder %s2209_s17, %s1814_s28 }
  0x86   : > { %s1819_s12 = scalar_lea.hbm %s2609_s2, 1024  ;;  %p1820_p9 = scmp.lt.u32.totalorder %s2209_s17, %s2609_s2 }
  0x87   : > { %p1817_p6 = pnand %p1815_p10, %p1786_p5  ;;  %p1821_p13 = scmp.lt.u32.totalorder %s1819_s12, %s1814_s28 }
  0x88   : > { %p1823_p4 = scmp.lt.u32.totalorder %s1814_s28, %s2209_s17 }
  0x89   : > { %p1818_p7 = pneg %p1817_p6  ;;  %p1822_p2 = por %p1821_p13, %p1820_p9 }
  0x8b   : > { %p1824_p8 = por %p1823_p4, %p1822_p2 }
  0x8d   : > { %p1825_p12 = pnand %p1824_p8, %p1818_p7 }
  0x8f   : > { %1828 = shalt.err (!%p1825_p12)
}
  0x90   : > { %s1829_s29 = scalar_lea.vmem %s359_s1, 128  ;;  %s1964_s15 = smov [#allocation7]  }
  0x91   : > { %p1830_p0 = scmp.ne.s32.totalorder %s359_s1, %s1829_s29  ;;  %s1834_s27 = sshll.u32 %s1964_s15, 4  ;;  %s1835_s27 = int_to_ptr.vmem [resolvable:$false] %s1834_s27 }
  0x92   : > { %s1836_s11 = scalar_lea.vmem %s1835_s27, 256  ;;  %p1837_p6 = scmp.lt.s32.totalorder %s359_s1, %s1835_s27 }
  0x93   : > { %p1832_p3 = pnand %p1830_p0, %p1786_p5  ;;  %p1838_p11 = scmp.lt.s32.totalorder %s1836_s11, %s1829_s29 }
  0x95   : > { %p1833_p10 = pneg %p1832_p3  ;;  %p1839_p9 = por %p1838_p11, %p1837_p6 }
  0x97   : > { %p1840_p13 = pnand %p1839_p9, %p1833_p10 }
  0x99   : > { %1843 = shalt.err (!%p1840_p13)
}
  0x9a   : > { %1652 = dma.hbm_to_vmem [thread:$0]  (!%p2168_p1), %s2209_s17, 128, %s359_s1, %s348_s19  }
  0x9b   : > { %p2648_p7 = scmp.ne.s32.totalorder %s2635_s25, 0 }
  0x9c   : > { %s2237_s28 = sand.u32 (!%p2648_p7), 1, %s1948_s18   ;;  %p2649_p11 = scmp.ne.s32.totalorder (!%p2648_p7), %s2632_s23, 0 }
  0x9d   : > { %367 = sbr.rel (%p2648_p7) target bundleno = 1930 (0x78a), region = 52  ;;  %s1357_s30 = sshll.u32 (!%p2648_p7), %s2237_s28, 4 }
  0x9e   : > { %s370_s26 = scalar_lea.sflag (!%p2648_p7), [#allocation5], %s2237_s28  ;;  %s2243_s5 = scalar_lea.vmem (!%p2648_p7), [#allocation4], %s1357_s30 }
  0xa4   : > { %1919 = dma.done.wait (%p2649_p11), %s370_s26, 256  }
  0xa5   : > { %1921 = vsyncadd (%p2649_p11), %s370_s26, 4294967040  ;;  %s378_s1 = sand.u32 1, %s2051_s21   ;;  %s1358_s19 = sshll.u32 %s2237_s28, 3 }
  0xa6   : > { %s379_s25 = scalar_lea.sflag [#allocation8], %s378_s1  ;;  %s2253_s13 = scalar_lea.vmem [#allocation7], %s1358_s19 }
  0xa7   : > { %1923 = dma.done.wait (%p2649_p11), %s379_s25, 128  }
  0xa8   : > { %1925 = vsyncadd (%p2649_p11), %s379_s25, 4294967168  ;;  %p2650_p1 = scmp.eq.s32.totalorder %s2051_s21, 0 }
  0xaa   : > { %1927 = dma.done.wait (%p2650_p1), [#allocation8], 2048   ;;  %p2651_p5 = pmov %p2650_p1 }
  0xab   : > { %p2652_p2 = pmov %p2650_p1 }
  0xac   : > { %1929 = vsyncadd (%p2651_p5), [#allocation8], 4294965248 }
  0xad   : > { %1931 = dma.done.wait (%p2652_p2), [#allocation11], 2048   ;;  %p2653_p4 = pmov %p2650_p1 }
  0xae   : > { %v536_v0 = vlaneseq  ;;  %s2268_s17 = sshll.u32 %s2051_s21, 7  ;;  %v1965_v1 = vmov 0.0   ;;  %vm1966_vm0 = vmmov 0   ;;  %v438_v3 = vld [vmem:[#allocation9] sm:$0xff]  ;;  %v439_v4 = vld [vmem:[#allocation9 + $0x8] sm:$0xff]  ;;  %v440_v5 = vld [vmem:[#allocation9 + $0x10] sm:$0xff] }
  0xaf   : > { %1933 = vsyncadd (%p2653_p4), [#allocation11], 4294965248  ;;  %1460 = vmatprep.subr.mxu1 %v1965_v1  ;;  %1462 = vmatprep.mubr.msk.f32.mxu1 %vm1966_vm0, %v1965_v1  ;;  %s2274_s23 = sld [smem:[#allocation3 + %s2268_s17]]  ;;  %s549_s3 = sadd.s32 1, %s2268_s17  ;;  %v1521_v7 = vpack.c.bf16 %v439_v4, %v438_v3  ;;  %v441_v8 = vld [vmem:[#allocation9 + $0x18] sm:$0xff]  ;;  %v442_v11 = vld [vmem:[#allocation9 + $0x20] sm:$0xff] }
  0xb0   : > { %s2277_s24 = sld [smem:[#allocation3 + %s549_s3]]  ;;  %s558_s12 = sadd.s32 2, %s2268_s17  ;;  %v2283_v2 = vand.u32 127, %v536_v0  ;;  %v1525_v10 = vpack.c.bf16 %v441_v8, %v440_v5  ;;  %v443_v12 = vld [vmem:[#allocation9 + $0x28] sm:$0xff]  ;;  %v444_v18 = vld [vmem:[#allocation9 + $0x30] sm:$0xff]  ;;  %v445_v19 = vld [vmem:[#allocation9 + $0x38] sm:$0xff] }
  0xb1   : > { %s2280_s16 = sld [smem:[#allocation3 + %s558_s12]]  ;;  %1522 = vmatprep.subr.bf16.mxu0 %v1521_v7  ;;  %v1529_v17 = vpack.c.bf16 %v443_v12, %v442_v11  ;;  %v2300_v20 = vld [vmem:[%s2243_s5] sm:$0xff]  ;;  %vm567_vm4 = vcmask 64512   ;;  %v642_v25 = vld [vmem:[#allocation10 + $0x8] sm:$0xff]  ;;  %v644_v28 = vld [vmem:[#allocation10 + $0x18] sm:$0xff]  ;;  %v1533_v29 = vpack.c.bf16 %v445_v19, %v444_v18  ;;  %v1967_v30 = vmov 0.0|0.0   ;;  %s2538_s26 = scalar_lea.hbm %s2617_s10, %s2268_s17 }
  0xb2   : > { %1524 = vmatpush3.bf16.msra.mxu0 %v1521_v7  ;;  %1457 = vmatprep.mubr.f32.mxu0 %v2300_v20  ;;  %v2305_v22 = vld [vmem:[%s2253_s13] sm:$0xff]  ;;  %v641_v24 = vld [vmem:[#allocation10] sm:$0xff]  ;;  %v447_v32 = vld [vmem:[#allocation9 + $0x48] sm:$0xff]  ;;  %vm814_vm10 = vcmask 130048   ;;  %s434_s15 = scalar_lea.vmem [#allocation13], %s1358_s19  ;;  %p2662_p12 = scmp.ne.s32.totalorder %s2641_s14, 0 }
  0xb3   : > { %1526 = vmatprep.subr.bf16.mxu0 %v1525_v10  ;;  %1461 = vmatpush3.msra.mxu1 %v2305_v22  ;;  %v1554_v26 = vpack.c.bf16 %v642_v25, %v641_v24  ;;  %v643_v27 = vld [vmem:[#allocation10 + $0x10] sm:$0xff]  ;;  %v446_v31 = vld [vmem:[#allocation9 + $0x40] sm:$0xff]  ;;  %v646_v35 = vld [vmem:[#allocation10 + $0x28] sm:$0xff]  ;;  %s1968_s17 = smov [#allocation13]  }
  0xb4   : > { %1553 = vmatprep.subr.bf16.mxu1 %v1967_v30  ;;  %v1557_v33 = vpack.c.bf16 %v644_v28, %v643_v27  ;;  %v645_v34 = vld [vmem:[#allocation10 + $0x20] sm:$0xff]  ;;  %v1537_v36 = vpack.c.bf16 %v447_v32, %v446_v31  ;;  %v448_v37 = vld [vmem:[#allocation9 + $0x50] sm:$0xff]  ;;  %v449_v38 = vld [vmem:[#allocation9 + $0x58] sm:$0xff]  ;;  %s1848_s25 = sshll.u32 %s1968_s17, 4  ;;  %s1849_s25 = int_to_ptr.vmem [resolvable:$false] %s1848_s25 }
  0xb5   : > { %v542_v6 = vstv %s2274_s23  ;;  %v1560_v39 = vpack.c.bf16 %v646_v35, %v645_v34  ;;  %v647_v40 = vld [vmem:[#allocation10 + $0x30] sm:$0xff]  ;;  %v648_v41 = vld [vmem:[#allocation10 + $0x38] sm:$0xff]  ;;  %v1541_v42 = vpack.c.bf16 %v449_v38, %v448_v37  ;;  %v450_v43 = vld [vmem:[#allocation9 + $0x60] sm:$0xff]  ;;  %s427_s23 = scalar_lea.vmem [#allocation12], %s1357_s30  ;;  %s1850_s13 = scalar_lea.vmem %s1849_s25, 256 }
  0xb6   : > { %vm543_vm1 = vcmp.eq.s32.totalorder %v2283_v2, %v542_v6  ;;  %v551_v9 = vstv %s2277_s24  ;;  %1528 = vmatpush3.bf16.msra.mxu0 %v1525_v10  ;;  %v451_v44 = vld [vmem:[#allocation9 + $0x68] sm:$0xff]  ;;  %v1563_v45 = vpack.c.bf16 %v648_v41, %v647_v40  ;;  %v649_v46 = vld [vmem:[#allocation10 + $0x40] sm:$0xff]  ;;  %v452_v49 = vld [vmem:[#allocation9 + $0x70] sm:$0xff]  ;;  %s1186_s29 = sshll.u32 %s427_s23, 4  ;;  %s1377_s24 = sshll.u32 %s2051_s21, 8  ;;  %s2526_s29 = int_to_ptr.vmem [resolvable:$true] %s1186_s29 }
  0xb7   : > { %v544_v13 = vsel %vm543_vm1, 1.0, %v1965_v1  ;;  %vm552_vm2 = vcmp.eq.s32.totalorder %v2283_v2, %v551_v9  ;;  %v560_v15 = vstv %s2280_s16  ;;  %1530 = vmatprep.subr.bf16.mxu0 %v1529_v17  ;;  %v650_v47 = vld [vmem:[#allocation10 + $0x48] sm:$0xff]  ;;  %v1545_v48 = vpack.c.bf16 %v451_v44, %v450_v43  ;;  %v453_v50 = vld [vmem:[#allocation9 + $0x78] sm:$0xff]  ;;  %v651_v52 = vld [vmem:[#allocation10 + $0x50] sm:$0xff]  ;;  %s1202_s16 = sshll.u32 %s434_s15, 4  ;;  %s2531_s19 = scalar_lea.hbm %s2616_s9, %s1377_s24  ;;  %s2540_s16 = int_to_ptr.vmem [resolvable:$true] %s1202_s16 }
  0xb8   : > { %v553_v14 = vsel %vm552_vm2, 1.0, %v1965_v1  ;;  %vm561_vm3 = vcmp.eq.s32.totalorder %v2283_v2, %v560_v15  ;;  %v1566_v51 = vpack.c.bf16 %v650_v47, %v649_v46  ;;  %v652_v53 = vld [vmem:[#allocation10 + $0x58] sm:$0xff]  ;;  %v1549_v54 = vpack.c.bf16 %v453_v50, %v452_v49  ;;  %v653_v56 = vld [vmem:[#allocation10 + $0x60] sm:$0xff]  ;;  %v654_v57 = vld [vmem:[#allocation10 + $0x68] sm:$0xff]  ;;  %s1844_s1 = scalar_lea.vmem %s2540_s16, 128  ;;  %p1851_p10 = scmp.lt.s32.totalorder %s2540_s16, %s1849_s25 }
  0xb9   : > { %v554_v16 = vadd.f32 %v553_v14, %v544_v13  ;;  %v562_v21 = vsel %vm561_vm3, 1.0, %v1965_v1  ;;  %v1569_v55 = vpack.c.bf16 %v652_v53, %v651_v52  ;;  %v1572_v58 = vpack.c.bf16 %v654_v57, %v653_v56  ;;  %v655_v59 = vld [vmem:[#allocation10 + $0x70] sm:$0xff]  ;;  %v656_v60 = vld [vmem:[#allocation10 + $0x78] sm:$0xff]  ;;  %p1845_p8 = scmp.ne.s32.totalorder %s2540_s16, %s1844_s1  ;;  %p1852_p6 = scmp.lt.s32.totalorder %s1850_s13, %s1844_s1 }
  0xba   : > { %1532 = vmatpush3.bf16.msra.mxu0 %v1529_v17  ;;  %v2318_v61 = vld [vmem:[%s2243_s5 + $0x8] sm:$0xff]  ;;  %v1575_v62 = vpack.c.bf16 %v656_v60, %v655_v59  ;;  %v1363_v4 = vld [vmem:[%s2611_s4] ss:$0 sm:$0xff]  ;;  %s1173_s5 = scalar_lea.sflag [#allocation14], %s2237_s28 }
  0xbb   : > { %v563_v23 = vadd.f32 %v562_v21, %v554_v16  ;;  %1534 = vmatprep.subr.bf16.mxu0 %v1533_v29  ;;  %v728_v12 = vld [vmem:[%s2614_s7] sm:$0x1]  ;;  %v2334_v16 = vshrl.u32 %v536_v0, 7  ;;  %p1846_p0 = pnand %p1845_p8, %p2662_p12  ;;  %p1853_p9 = por %p1852_p6, %p1851_p10 }
  0xbd   : > { %1463 = vmatmul.mubr.msk.f32.vlgmr.msra.gmra.mrb[0].mxu1 %vm567_vm4, %v563_v23  ;;  %v2337_v17 = vadd.s32 8, %v2334_v16  ;;  %v802_v18 = vadd.s32 4, %v2334_v16  ;;  %vm800_vm5 = vcmp.ge.s32.totalorder %v2283_v2, %v2334_v16  ;;  %v2345_v21 = vsub.s32 0, %v2334_v16  ;;  %v1041_v23 = vld [vmem:[%s2615_s8 + $0x20] sm:$0xff]  ;;  %p1847_p3 = pneg %p1846_p0 }
  0xbe   : > { %1555 = vmatpush3.bf16.msra.mxu1 %v1554_v26  ;;  %1497 = vmatprep.mubr.msk.f32.mxu1 %vm1966_vm0, %v1965_v1 }
  0xbf   : > { %1556 = vmatprep.subr.bf16.mxu1 %v1967_v30  ;;  %1536 = vmatpush3.bf16.msra.mxu0 %v1533_v29  ;;  %v803_v19 = vadd.s32 4, %v2337_v17  ;;  %vm804_vm6 = vcmp.lt.s32.totalorder %v2283_v2, %v802_v18  ;;  %vm801_vm7 = vcmp.ge.s32.totalorder %v2283_v2, %v2337_v17  ;;  %vm933_vm14 = vcmp.lt.s32.totalorder %v2337_v17, 13  ;;  %v1044_v18 = vld [vmem:[%s2615_s8 + $0x38] sm:$0xff]  ;;  %p1854_p13 = pnand %p1853_p9, %p1847_p3 }
  0xc0   : > { %1538 = vmatprep.subr.bf16.mxu0 %v1537_v36  ;;  %vm2350_vm9 = vmand %vm800_vm5, %vm804_vm6 }
  0xc1   : > { %vm805_vm8 = vcmp.lt.s32.totalorder %v2283_v2, %v803_v19 }
  0xc2   : > { %1558 = vmatpush3.bf16.msra.mxu1 %v1557_v33  ;;  %vm2355_vm11 = vmand %vm801_vm7, %vm805_vm8 }
  0xc3   : > { %1559 = vmatprep.subr.bf16.mxu1 %v1967_v30  ;;  %1540 = vmatpush3.bf16.msra.mxu0 %v1537_v36 }
  0xc4   : > { %1542 = vmatprep.subr.bf16.mxu0 %v1541_v42 }
  0xc6   : > { %1561 = vmatpush3.bf16.msra.mxu1 %v1560_v39 }
  0xc7   : > { %1562 = vmatprep.subr.bf16.mxu1 %v1967_v30  ;;  %1544 = vmatpush3.bf16.msra.mxu0 %v1541_v42 }
  0xc8   : > { %1546 = vmatprep.subr.bf16.mxu0 %v1545_v48 }
  0xca   : > { %1564 = vmatpush3.bf16.msra.mxu1 %v1563_v45 }
  0xcb   : > { %1565 = vmatprep.subr.bf16.mxu1 %v1967_v30  ;;  %1548 = vmatpush3.bf16.msra.mxu0 %v1545_v48 }
  0xcc   : > { %1550 = vmatprep.subr.bf16.mxu0 %v1549_v54 }
  0xce   : > { %1567 = vmatpush3.bf16.msra.mxu1 %v1566_v51  ;;  %v657_v51 = vld [vmem:[%s2613_s6] sm:$0x1] }
  0xcf   : > { %1568 = vmatprep.subr.bf16.mxu1 %v1967_v30  ;;  %1552 = vmatpush3.bf16.msra.mxu0 %v1549_v54 }
  0xd2   : > { %1570 = vmatpush3.bf16.msra.mxu1 %v1569_v55  ;;  %1458 = vmatmul.mubr.f32.vlgmr.msra.gmra.mrb[0].mxu0 %v2318_v61 }
  0xd3   : > { %1571 = vmatprep.subr.bf16.mxu1 %v1967_v30  ;;  %1133 = vmatprep.mubr.f32.mxu0 %v1965_v1 }
  0xd6   : > { %1573 = vmatpush3.bf16.msra.mxu1 %v1572_v58 }
  0xd7   : > { %1574 = vmatprep.subr.bf16.mxu1 %v1967_v30 }
  0xda   : > { %1576 = vmatpush3.bf16.msra.mxu1 %v1575_v62 }
  0xdb   : > { %1577 = vmatprep.subr.bf16.mxu1 %v1967_v30 }
 0x190   : > { %v637_v63 = vpop.f32.mrb[0].mxu1 }
 0x191   : > { %v1464_v3 = vpop.f32.mrb[1].mxu1  ;;  %1498 = vmatmul.mubr.f32.vlgmr.msra.gmra.mrb[2].mxu1 %v637_v63 }
 0x192   : > { %1504 = vmatprep.mubr.msk.f32.mxu1 %vm1966_vm0, %v1965_v1 }
 0x1a5   : > { %v1459_v5 = vpop.f32.mrb[0].mxu0 }
 0x1a6   : > { %v533_v7 = vadd.f32 %v1459_v5, %v1363_v4  ;;  %v527_v8 = vpop.f32.mrb[1].mxu0 }
 0x1a7   : > { %v528_v10 = vadd.f32 %v1363_v4, %v527_v8  ;;  %v1040_v8 = vld [vmem:[%s2615_s8 + $0x18] sm:$0xff] }
 0x1a9   : > { %v1578_v11 = vpack.c.bf16 %v533_v7, %v528_v10  ;;  %v1038_v7 = vld [vmem:[%s2615_s8 + $0x8] sm:$0xff]  ;;  %v1037_v10 = vld [vmem:[%s2615_s8] sm:$0xff] }
 0x1ab   : > { %1579 = vmatpush3.bf16.xpose.msra.mxu1 %v1578_v11 }
 0x1ac   : > { %1581 = vmatprep.subr.bf16.mxu1 %v1578_v11 }
 0x1b2   : > { %1505 = vmatmul.mubr.f32.vlgmr.msra.gmra.mrb[4].mxu1 %v728_v12  ;;  %v1587_v12 = vpack.c.bf16 %v1040_v8, %v1038_v7 }
 0x1b3   : > { %1583 = vmatpush3.bf16.msra.mxu1 %v1578_v11 }
 0x1b4   : > { %1584 = vmatprep.subr.bf16.mxu1 %v1967_v30  ;;  %1588 = vmatprep.subr.bf16.mxu0 %v1587_v12 }
 0x264   : > { %v724_v13 = vpop.f32.mrb[2].mxu1 }
 0x265   : > { %v1499_v14 = vpop.f32.mrb[3].mxu1  ;;  %v725_v52 = vadd.f32 %v724_v13, %v657_v51  ;;  %v1039_v13 = vld [vmem:[%s2615_s8 + $0x10] sm:$0xff]  ;;  %v1062_v51 = vld [vmem:[%s2615_s8 + $0xc8] sm:$0xff] }
 0x266   : > { %v1042_v14 = vld [vmem:[%s2615_s8 + $0x28] sm:$0xff]  ;;  %v1589_v19 = vpack.c.bf16 %v1039_v13, %v1037_v10 }
 0x267   : > { %v846_v53 = vrot.slane %v725_v52, %v2345_v21  ;;  %v1064_v52 = vld [vmem:[%s2615_s8 + $0xd8] sm:$0xff] }
 0x268   : > { %1590 = vmatpush1.bf16.msra.mxu0 %v1589_v19 }
 0x285   : > { %v795_v0 = vpop.f32.mrb[4].mxu1 }
 0x286   : > { %v811_v24 = vrot.slane %v795_v0, %v2345_v21  ;;  %v1506_v25 = vpop.f32.mrb[5].mxu1  ;;  %v1591_v0 = vpack.c.bf16 %v1044_v18, %v1042_v14 }
 0x287   : > { %v1046_v25 = vld [vmem:[%s2615_s8 + $0x48] sm:$0xff] }
 0x288   : > { %v812_v27 = vsel %vm2350_vm9, %v811_v24, -1e+30  ;;  %v813_v29 = vsel %vm2355_vm11, %v811_v24, -1e+30  ;;  %v1043_v24 = vld [vmem:[%s2615_s8 + $0x30] sm:$0xff]  ;;  %1592 = vmatprep.subr.bf16.mxu0 %v1591_v0 }
 0x289   : > { %v815_v28 = vsel %vm814_vm10, %v812_v27, -inf  ;;  %v818_v30 = vsel %vm814_vm10, %v813_v29, -inf }
 0x28a   : > { %816 = vmax.xlane.f32.xlu0 %v815_v28  ;;  %v1593_v28 = vpack.c.bf16 %v1043_v24, %v1041_v23 }
 0x28c   : > { %1594 = vmatpush1.bf16.msra.mxu0 %v1593_v28 }
 0x28e   : > { %819 = vmax.xlane.f32.xlu0 %v818_v30 }
 0x317   : > { %v817_v31 = vpop.xlane.xlu0 %816 }
 0x318   : > { %v821_v32 = vsub.f32 %v812_v27, %v817_v31  ;;  %v1048_v27 = vld [vmem:[%s2615_s8 + $0x58] sm:$0xff]  ;;  %v1045_v31 = vld [vmem:[%s2615_s8 + $0x40] sm:$0xff] }
 0x319   : > { %v1595_v30 = vpack.c.bf16 %v1048_v27, %v1046_v25 }
 0x31a   : > { %v823_v33 = vmul.f32 1.442695, %v821_v32  ;;  %v1047_v32 = vld [vmem:[%s2615_s8 + $0x50] sm:$0xff] }
 0x31b   : > { %v820_v34 = vpop.xlane.xlu0 %819  ;;  %1596 = vmatprep.subr.bf16.mxu0 %v1595_v30 }
 0x31c   : > { %1708 = vpow2.f32 %v823_v33  ;;  %v822_v35 = vsub.f32 %v813_v29, %v820_v34  ;;  %v1050_v33 = vld [vmem:[%s2615_s8 + $0x68] sm:$0xff]  ;;  %v1052_v34 = vld [vmem:[%s2615_s8 + $0x78] sm:$0xff] }
 0x31e   : > { %v825_v36 = vmul.f32 1.442695, %v822_v35  ;;  %v1597_v35 = vpack.c.bf16 %v1047_v32, %v1045_v31 }
 0x320   : > { %1710 = vpow2.f32 %v825_v36  ;;  %v1599_v36 = vpack.c.bf16 %v1052_v34, %v1050_v33  ;;  %1598 = vmatpush1.bf16.msra.mxu0 %v1597_v35 }
 0x322   : > { %1600 = vmatprep.subr.bf16.mxu0 %v1599_v36 }
 0x326   : > { %v1709_v37 = vpop.eup %1708 }
 0x327   : > { %v827_v38 = vsel %vm2350_vm9, %v1709_v37, 0.0  ;;  %v1049_v37 = vld [vmem:[%s2615_s8 + $0x60] sm:$0xff] }
 0x328   : > { %v829_v39 = vsel %vm814_vm10, %v827_v38, 0.0 }
 0x329   : > { %830 = vadd.xlane.f32.xlu1 %v829_v39  ;;  %v1054_v39 = vld [vmem:[%s2615_s8 + $0x88] sm:$0xff] }
 0x32a   : > { %v1711_v40 = vpop.eup %1710 }
 0x32b   : > { %v828_v41 = vsel %vm2355_vm11, %v1711_v40, 0.0  ;;  %v1056_v40 = vld [vmem:[%s2615_s8 + $0x98] sm:$0xff] }
 0x32c   : > { %v832_v42 = vsel %vm814_vm10, %v828_v41, 0.0 }
 0x32d   : > { %833 = vadd.xlane.f32.xlu1 %v832_v42  ;;  %v1603_v42 = vpack.c.bf16 %v1056_v40, %v1054_v39 }
 0x3b6   : > { %v831_v43 = vpop.xlane.xlu1 %830 }
 0x3b7   : > { %vm835_vm12 = vcmp.gt.f32.partialorder %v831_v43, 0.0 }
 0x3b8   : > { %v837_v44 = vsel %vm835_vm12, %v831_v43, 1.0  ;;  %v1053_v43 = vld [vmem:[%s2615_s8 + $0x80] sm:$0xff] }
 0x3b9   : > { %1712 = vrcp.f32 %v837_v44  ;;  %v1055_v44 = vld [vmem:[%s2615_s8 + $0x90] sm:$0xff] }
 0x3ba   : > { %v834_v45 = vpop.xlane.xlu1 %833 }
 0x3bb   : > { %vm836_vm13 = vcmp.gt.f32.partialorder %v834_v45, 0.0 }
 0x3bc   : > { %v838_v46 = vsel %vm836_vm13, %v834_v45, 1.0  ;;  %v1058_v45 = vld [vmem:[%s2615_s8 + $0xa8] sm:$0xff]  ;;  %vm546_vm13 = vcmp.eq.s32.totalorder %v2334_v16, %v542_v6 }
 0x3bd   : > { %1714 = vrcp.f32 %v838_v46  ;;  %v1060_v46 = vld [vmem:[%s2615_s8 + $0xb8] sm:$0xff] }
 0x3c3   : > { %v1713_v47 = vpop.eup %1712 }
 0x3c4   : > { %v840_v48 = vmul.f32 %v1713_v47, %v827_v38  ;;  %v1051_v38 = vld [vmem:[%s2615_s8 + $0x70] sm:$0xff]  ;;  %v1605_v47 = vpack.c.bf16 %v1055_v44, %v1053_v43 }
 0x3c6   : > { %1511 = vmatprep.mubr.msk.f32.mxu1 %vm814_vm10, %v840_v48  ;;  %v1607_v48 = vpack.c.bf16 %v1060_v46, %v1058_v45 }
 0x3c7   : > { %v1715_v49 = vpop.eup %1714 }
 0x3c8   : > { %v842_v50 = vmul.f32 %v1715_v49, %v828_v41  ;;  %v1601_v41 = vpack.c.bf16 %v1051_v38, %v1049_v37  ;;  %v1057_v49 = vld [vmem:[%s2615_s8 + $0xa0] sm:$0xff] }
 0x3ca   : > { %1512 = vmatmul.mubr.msk.f32.vlgmr.msra.gmra.mrb[6].mxu1 %vm814_vm10, %v842_v50  ;;  %1602 = vmatpush1.bf16.msra.mxu0 %v1601_v41  ;;  %v1059_v50 = vld [vmem:[%s2615_s8 + $0xb0] sm:$0xff] }
 0x3cb   : > { %1518 = vmatprep.mubr.msk.f32.mxu1 %vm1966_vm0, %v1965_v1  ;;  %1604 = vmatprep.subr.bf16.mxu0 %v1603_v42 }
 0x3ce   : > { %1606 = vmatpush1.bf16.msra.mxu0 %v1605_v47 }
 0x3cf   : > { %1608 = vmatprep.subr.bf16.mxu0 %v1607_v48 }
 0x49d   : > { %v1513_v54 = vpop.f32.mrb[6].mxu1 }
 0x49e   : > { %v925_v55 = vadd.f32 %v1513_v54, %v846_v53  ;;  %v919_v56 = vpop.f32.mrb[7].mxu1  ;;  %v1611_v54 = vpack.c.bf16 %v1064_v52, %v1062_v51 }
 0x49f   : > { %v920_v57 = vadd.f32 %v919_v56, %v846_v53  ;;  %v1609_v53 = vpack.c.bf16 %v1059_v50, %v1057_v49  ;;  %v1063_v56 = vld [vmem:[%s2615_s8 + $0xd0] sm:$0xff] }
 0x4a0   : > { %930 = vadd.xlane.f32.xlu0 %v925_v55 }
 0x4a1   : > { %v1585_v58 = vpack.c.bf16 %v925_v55, %v920_v57  ;;  %928 = vadd.xlane.f32.xlu1 %v920_v57  ;;  %v1061_v55 = vld [vmem:[%s2615_s8 + $0xc0] sm:$0xff]  ;;  %v1066_v57 = vld [vmem:[%s2615_s8 + $0xe8] sm:$0xff]  ;;  %1610 = vmatpush1.bf16.msra.mxu0 %v1609_v53 }
 0x4a2   : > { %1612 = vmatprep.subr.bf16.mxu0 %v1611_v54 }
 0x4a3   : > { %1586 = vmatpush3.bf16.msra.mxu1 %v1585_v58  ;;  %v1068_v58 = vld [vmem:[%s2615_s8 + $0xf8] sm:$0xff] }
 0x52d   : > { %v931_v59 = vpop.xlane.xlu0 %930 }
 0x52e   : > { %v2380_v60 = vsel %vm933_vm14, %v931_v59, -3e+38  ;;  %v2382_v62 = vpop.xlane.xlu1 %928  ;;  %v1613_v59 = vpack.c.bf16 %v1063_v56, %v1061_v55  ;;  %vm555_vm14 = vcmp.eq.s32.totalorder %v2334_v16, %v551_v9 }
 0x52f   : > { %v936_v63 = vmax.f32 %v2382_v62, %v2380_v60  ;;  %v556_v28 = vsel %vm555_vm14, 1.0, %v1965_v1 }
 0x530   : > { %1614 = vmatpush1.bf16.msra.mxu0 %v1613_v59 }
 0x531   : > { %v937_v3 = vrot.slane %v936_v63, 4 }
 0x533   : > { %v938_v4 = vmax.f32 %v936_v63, %v937_v3  ;;  %v1615_v63 = vpack.c.bf16 %v1068_v58, %v1066_v57  ;;  %v1065_v3 = vld [vmem:[%s2615_s8 + $0xe0] sm:$0xff] }
 0x535   : > { %v939_v5 = vrot.slane %v938_v4, 2  ;;  %1616 = vmatprep.subr.bf16.mxu0 %v1615_v63 }
 0x537   : > { %v940_v11 = vmax.f32 %v938_v4, %v939_v5  ;;  %v1067_v4 = vld [vmem:[%s2615_s8 + $0xf0] sm:$0xff] }
 0x538   : > { %v1617_v5 = vpack.c.bf16 %v1067_v4, %v1065_v3 }
 0x539   : > { %v941_v26 = vrot.slane %v940_v11, 1 }
 0x53a   : > { %1618 = vmatpush1.bf16.msra.mxu0 %v1617_v5 }
 0x53b   : > { %v942_v29 = vmax.f32 %v940_v11, %v941_v26 }
 0x53d   : > { %1619 = vpush %v942_v29 }
 0x56e   : > { %s1620_s3 = spop %1619 }
 0x56f   : > { %v944_v7 = vstv %s1620_s3 }
 0x570   : > { %vm945_vm15 = vcmp.eq.f32.partialorder %v2382_v62, %v944_v7  ;;  %vm946_vm0 = vcmp.eq.f32.partialorder %v2380_v60, %v944_v7 }
 0x571   : > { %v947_v8 = vsel %vm945_vm15, %v2334_v16, 16  ;;  %v948_v10 = vsel %vm946_vm0, %v2337_v17, 16 }
 0x572   : > { %vm949_vm1 = vcmp.lt.s32.totalorder %v947_v8, %v948_v10 }
 0x573   : > { %v950_v11 = vsel %vm949_vm1, %v947_v8, %v948_v10 }
 0x574   : > { %v951_v12 = vrot.slane %v950_v11, 4 }
 0x576   : > { %vm952_vm2 = vcmp.lt.s32.totalorder %v950_v11, %v951_v12 }
 0x577   : > { %v953_v13 = vsel %vm952_vm2, %v950_v11, %v951_v12 }
 0x578   : > { %v954_v14 = vrot.slane %v953_v13, 2 }
 0x57a   : > { %vm955_vm3 = vcmp.lt.s32.totalorder %v953_v13, %v954_v14 }
 0x57b   : > { %v956_v18 = vsel %vm955_vm3, %v953_v13, %v954_v14 }
 0x57c   : > { %v957_v19 = vrot.slane %v956_v18, 1 }
 0x57e   : > { %vm958_vm4 = vcmp.lt.s32.totalorder %v956_v18, %v957_v19 }
 0x57f   : > { %v959_v0 = vsel %vm958_vm4, %v956_v18, %v957_v19 }
 0x580   : > { %1621 = vpush %v959_v0 }
 0x5b1   : > { %s1622_s12 = spop %1621 }
 0x5b2   : > { %v961_v62 = vstv %s1622_s12  ;;  %s1149_s22 = sadd.s32 4, %s1622_s12 }
 0x5b3   : > { %vm962_vm5 = vcmp.eq.s32.totalorder %v2283_v2, %v961_v62  ;;  %vm1147_vm6 = vcmp.ge.s32.totalorder %v2334_v16, %v961_v62  ;;  %vm1148_vm7 = vcmp.ge.s32.totalorder %v2337_v17, %v961_v62  ;;  %v1150_v60 = vstv %s1149_s22 }
 0x5b4   : > { %v963_v23 = vsel %vm962_vm5, 1.0, %v1965_v1  ;;  %vm1151_vm8 = vcmp.lt.s32.totalorder %v2334_v16, %v1150_v60  ;;  %vm1152_vm9 = vcmp.lt.s32.totalorder %v2337_v17, %v1150_v60  ;;  %v547_v17 = vsel %vm546_vm13, 1.0, %v1965_v1 }
 0x5b5   : > { %vm2492_vm11 = vmand %vm1147_vm6, %vm1151_vm8  ;;  %1519 = vmatmul.mubr.msk.f32.vlgmr.msra.gmra.mrb[8].mxu1 %vm814_vm10, %v963_v23  ;;  %v548_v27 = vmax.f32 %v547_v17, 0.0  ;;  %vm564_vm10 = vcmp.eq.s32.totalorder %v2334_v16, %v560_v15 }
 0x5b6   : > { %vm2497_vm12 = vmand %vm1148_vm7, %vm1152_vm9  ;;  %v565_v30 = vsel %vm564_vm10, 1.0, %v1965_v1  ;;  %v1155_v16 = vsel %vm2492_vm11, 1.0, %v1965_v1 }
 0x5b7   : > { %v557_v29 = vmax.f32 %v548_v27, %v556_v28  ;;  %v1156_v34 = vsel %vm2497_vm12, 1.0, %v1965_v1 }
 0x5b9   : > { %v566_v31 = vmax.f32 %v557_v29, %v565_v30 }
 0x688   : > { %v1033_v25 = vpop.f32.mrb[8].mxu1 }
 0x689   : > { %v1520_v26 = vpop.f32.mrb[9].mxu1  ;;  %1134 = vmatmul.mubr.f32.vlgmr.msra.gmra.mrb[2].mxu0 %v1033_v25 }
 0x75c   : > { %v1135_v32 = vpop.f32.mrb[2].mxu0 }
 0x75d   : > { %v1143_v6 = vrot.slane %v1135_v32, %v2345_v21  ;;  %v1137_v33 = vpop.f32.mrb[3].mxu0 }
 0x75e   : > { %v1160_v9 = vrot.slane %v1137_v33, %v2345_v21 }
 0x75f   : > { %v1144_v15 = vmul.f32 %v1143_v6, %v566_v31 }
 0x760   : > { %v1161_v35 = vmul.f32 %v1160_v9, %v1155_v16  ;;  %v1162_v36 = vmul.f32 %v1160_v9, %v1156_v34 }
 0x761   : > { %v1145_v21 = vadd.f32 %v1144_v15, %v2305_v22 }
 0x762   : > { %v1163_v1 = vadd.f32 %v1161_v35, %v2300_v20  ;;  %v1164_v37 = vadd.f32 %v1162_v36, %v2318_v61 }
 0x763   : > { %1146 = vst [vmem:[%s434_s15] sm:$0xff] %v1145_v21 }
 0x764   : > { %1165 = vst [vmem:[%s427_s23] sm:$0xff] %v1163_v1  ;;  %1166 = vst [vmem:[%s427_s23 + $0x8] sm:$0xff] %v1164_v37 }
 0x765   : > { %1857 = shalt.err (!%p1854_p13)
}
 0x766   : > { %s1858_s3 = scalar_lea.hbm %s2538_s26, 128  ;;  %s1862_s23 = scalar_lea.hbm %s2617_s10, 1024 }
 0x767   : > { %p1859_p7 = scmp.ne.s32.totalorder %s2538_s26, %s1858_s3  ;;  %p1863_p5 = scmp.lt.u32.totalorder %s2538_s26, %s2617_s10 }
 0x768   : > { %p1864_p2 = scmp.lt.u32.totalorder %s1862_s23, %s1858_s3  ;;  %p1866_p8 = scmp.lt.u32.totalorder %s1858_s3, %s2538_s26 }
 0x769   : > { %p1860_p11 = pnand %p1859_p7, %p2662_p12 }
 0x76a   : > { %p1865_p4 = por %p1864_p2, %p1863_p5 }
 0x76b   : > { %p1861_p1 = pneg %p1860_p11 }
 0x76c   : > { %p1867_p0 = por %p1866_p8, %p1865_p4 }
 0x76e   : > { %p1868_p3 = pnand %p1867_p0, %p1861_p1 }
 0x770   : > { %1871 = shalt.err (!%p1868_p3)
}
 0x771   : > { %1636 = dma.vmem_to_hbm [thread:$0]  (%p2662_p12), %s2540_s16, 128, %s2538_s26, %s1173_s5  }
 0x772   : > { %s1168_s21 = scalar_lea.sflag [#allocation6], %s2237_s28  ;;  %s1872_s30 = scalar_lea.vmem %s2526_s29, 256 }
 0x773   : > { %p1873_p10 = scmp.ne.s32.totalorder %s2526_s29, %s1872_s30  ;;  %s1969_s27 = smov [#allocation12]  }
 0x774   : > { %s1876_s11 = sshll.u32 %s1969_s27, 4  ;;  %s1877_s11 = int_to_ptr.vmem [resolvable:$false] %s1876_s11 }
 0x775   : > { %p1874_p6 = pnand %p1873_p10, %p2662_p12  ;;  %s1878_s1 = scalar_lea.vmem %s1877_s11, 512 }
 0x776   : > { %p1879_p13 = scmp.lt.s32.totalorder %s2526_s29, %s1877_s11  ;;  %p1880_p7 = scmp.lt.s32.totalorder %s1878_s1, %s1872_s30 }
 0x777   : > { %p1875_p9 = pneg %p1874_p6 }
 0x778   : > { %p1881_p11 = por %p1880_p7, %p1879_p13 }
 0x77a   : > { %p1882_p1 = pnand %p1881_p11, %p1875_p9 }
 0x77c   : > { %1885 = shalt.err (!%p1882_p1)
}
 0x77d   : > { %s1886_s16 = scalar_lea.hbm %s2531_s19, 256  ;;  %s1890_s17 = scalar_lea.hbm %s2616_s9, 2048 }
 0x77e   : > { %p1887_p5 = scmp.ne.s32.totalorder %s2531_s19, %s1886_s16  ;;  %p1891_p8 = scmp.lt.u32.totalorder %s2531_s19, %s2616_s9 }
 0x77f   : > { %p1892_p0 = scmp.lt.u32.totalorder %s1890_s17, %s1886_s16  ;;  %p1894_p10 = scmp.lt.u32.totalorder %s1886_s16, %s2531_s19 }
 0x780   : > { %p1888_p2 = pnand %p1887_p5, %p2662_p12 }
 0x781   : > { %p1893_p3 = por %p1892_p0, %p1891_p8 }
 0x782   : > { %p1889_p4 = pneg %p1888_p2 }
 0x783   : > { %p1895_p6 = por %p1894_p10, %p1893_p3 }
 0x785   : > { %p1896_p9 = pnand %p1895_p6, %p1889_p4 }
 0x787   : > { %1899 = shalt.err (!%p1896_p9)
}
 0x788   : > { %s1970_s3 = smov 128   ;;  %s1971_s12 = smov 8  }
 0x789   : > { %1635 = dma.vmem_to_hbm [thread:$0]  (%p2662_p12), %s2526_s29, 256, %s2531_s19, %s1168_s21, %s1970_s3, %s1970_s3, %s1971_s12  }
 0x78a PF: > { %s2663_s22 = sld [smem:[#allocation23_spill]]  ;;  %p1665_p13 = scmp.ge.s32.totalorder %s1956_s20, 2 }
 0x78b   : > { %s1214_s23 = sand.u32 1, %s1944_s0  }
 0x78c   : > { %s1215_s24 = scalar_lea.sflag [#allocation6], %s1214_s23 }
 0x790   : > { %p2664_p7 = scmp.ne.s32.totalorder %s2663_s22, 0 }
 0x792   : > { %p1654_p11 = pnand %p1665_p13, %p2664_p7 }
 0x794   : > { %1935 = dma.done.wait (!%p1654_p11), %s1215_s24, 256  }
 0x795   : > { %1937 = vsyncadd (!%p1654_p11), %s1215_s24, 4294967040  ;;  %s1224_s15 = scalar_lea.sflag [#allocation14], %s1214_s23 }
 0x796   : > { %1939 = dma.done.wait (!%p1654_p11), %s1224_s15, 128  }
 0x797   : > { %1941 = vsyncadd (!%p1654_p11), %s1224_s15, 4294967168  ;;  %s2665_s20 = sld [smem:[#allocation24_spill]]  ;;  %s2666_s30 = sld [smem:[#allocation22_spill]] }
 0x798   : > { %s2667_s19 = sld [smem:[#allocation25_spill]]  ;;  %s2668_s0 = smov %s1948_s18 }
 0x79d   : > { %p37_p12 = scmp.ge.s32.totalorder %s2665_s20, 10   ;;  %s2669_s18 = smov %s2666_s30 }
 0x79f   :  { %39 = sbr.rel (!%p37_p12) target bundleno = 26 (0x1a), region = 135 }
 0x7a6   :  { %1229 = vsyncpa [#allocation5], 1 }
 0x7a7   :  { %1231 = vsyncpa [#allocation5 + $0x1], 1 }
 0x7a8   :  { %1232 = vsyncpa [#allocation8], 1 }
 0x7a9   :  { %1234 = vsyncpa [#allocation8 + $0x1], 1 }
 0x7aa   :  { %1235 = vsyncpa [#allocation11], 1 }
 0x7ab   :  { %1236 = vsyncpa [#allocation6], 1 }
 0x7ac   :  { %1238 = vsyncpa [#allocation6 + $0x1], 1 }
 0x7ad   :  { %1239 = vsyncpa [#allocation14], 1 }
 0x7ae   :  { %1241 = vsyncpa [#allocation14 + $0x1], 1 }

</bundles_post_ra>
